<compile_context>
chip_gen: v6e
topology: v6e:2x2x1
jax: 0.10.0
libtpu: 0.0.40
codegen_flags: <defaults>
</compile_context>

<pallas_src>
import functools
import math

import jax
import jax.numpy as jnp
import numpy as np
from jax.experimental import pallas as pl
from jax.experimental.pallas import tpu as pltpu


def _round_up(x, m):
    return ((x + m - 1) // m) * m


def _device_vmem_budget_bytes():
    """VMEM bytes this kernel may use (leaves headroom for compiler scratch)."""
    try:
        cap = int(pltpu.get_tpu_info().vmem_capacity_bytes)
    except Exception:
        cap = 64 << 20  # conservative: v7x per-TensorCore physical VMEM
    # ~80% of physical: ~102 MiB on v5e/v6e (128 MiB), ~51 MiB on v7x (64 MiB).
    return min(int(cap * 0.8), 110 << 20)


# ---------------------------------------------------------------------------
# Kernels
# ---------------------------------------------------------------------------

def _linear_relu_resident_kernel(x_ref, w_ref, b_ref, o_ref, *, mxu_dtype):
    """One row tile of ReLU(x @ W + b) with the full weight VMEM-resident."""
    x = x_ref[...]
    w = w_ref[...]
    if mxu_dtype is not None:
        x = x.astype(mxu_dtype)
        w = w.astype(mxu_dtype)
    y = jnp.dot(x, w, preferred_element_type=jnp.float32)
    y = y + b_ref[...].astype(jnp.float32)          # [1, N] broadcasts over rows
    o_ref[...] = jnp.maximum(y, 0.0).astype(o_ref.dtype)


def _linear_relu_tiled_kernel(x_ref, w_ref, b_ref, o_ref, acc_ref, *, mxu_dtype):
    """3-D tiled matmul: accumulate over K tiles, bias+ReLU on the last K step."""
    k = pl.program_id(2)

    @pl.when(k == 0)
    def _():
        acc_ref[...] = jnp.zeros_like(acc_ref)

    x = x_ref[...]
    w = w_ref[...]
    if mxu_dtype is not None:
        x = x.astype(mxu_dtype)
        w = w.astype(mxu_dtype)
    acc_ref[...] += jnp.dot(x, w, preferred_element_type=jnp.float32)

    @pl.when(k == pl.num_programs(2) - 1)
    def _():
        y = acc_ref[...] + b_ref[...].astype(jnp.float32)
        o_ref[...] = jnp.maximum(y, 0.0).astype(o_ref.dtype)


# ---------------------------------------------------------------------------
# Tile selection
# ---------------------------------------------------------------------------

def _choose_tm_resident(M, K, N, x_bytes, w_bytes, o_bytes, budget):
    resident = K * N * w_bytes + N * 4                 # single-buffered W + bias
    per_row = 2 * (K * x_bytes + N * o_bytes)          # double-buffered x + out tiles
    tm = max((budget - resident) // max(per_row, 1), 8)
    if tm >= 256:
        tm = (tm // 256) * 256                         # MXU-friendly 256 alignment
    else:
        tm = (tm // 8) * 8
    tm = int(min(tm, 1024))
    tm = min(tm, _round_up(M, 8))
    tm = max(tm, 8)
    # Give both TensorCores work on v7x when M is large enough for >= 2 row tiles.
    if tm >= M and M > 512:
        tm = _round_up(-(-M // 2), 8)
    return tm


def _choose_tiles_3d(M, K, N, x_bytes, w_bytes, o_bytes, budget):
    # Lane-dense N tile (multiple of 128); 256 matches the v6e/v7x MXU.
    tn = _round_up(N, 128) if N <= 256 else 256
    # K tile must divide K exactly (or equal K) so no padded garbage enters the
    # reduction; prefer large multiples of 128 that keep weight tiles in budget.
    tk = K
    for cand in (2048, 1024, 512, 256, 128):
        if K % cand == 0 and (2 * cand * tn * w_bytes <= budget // 2 or cand == 128):
            tk = cand
            break
    per_row = 2 * (tk * x_bytes + tn * o_bytes) + tn * 4       # x, out, f32 acc
    fixed = 2 * tk * tn * w_bytes + tn * 4                      # weight tiles + bias
    tm = max((budget - fixed) // max(per_row, 1), 8)
    if tm >= 256:
        tm = (tm // 256) * 256
    else:
        tm = (tm // 8) * 8
    tm = int(min(tm, 512))
    tm = min(tm, _round_up(M, 8))
    tm = max(tm, 8)
    return tm, tn, tk


# ---------------------------------------------------------------------------
# Wrapper (the nn.Module forward)
# ---------------------------------------------------------------------------

def linear_activated(x, w, b, split=None, *, mxu_dtype=jnp.bfloat16,
                     vmem_budget_bytes=None, force_tiled=False):
    """ReLU(x @ w + b), optionally chunked (torch .chunk semantics) along dim 2.

    x: [..., in_features]; w: [in_features, out_features]; b: [1, out_features].
    mxu_dtype: dtype fed to the MXU (bf16 default, f32 accumulation); None = no cast.
    """
    *lead, K = x.shape
    Kw, N = w.shape
    assert Kw == K, (Kw, K)
    M = math.prod(lead) if lead else 1
    x2 = x.reshape(M, K)            # collapse leading dims: layout-preserving, no copy
    out_dtype = x.dtype

    x_bytes = x.dtype.itemsize
    w_bytes = w.dtype.itemsize
    o_bytes = jnp.dtype(out_dtype).itemsize

    vmem_limit = _device_vmem_budget_bytes()
    budget = vmem_budget_bytes if vmem_budget_bytes is not None else vmem_limit

    cost = pl.CostEstimate(
        flops=2 * M * K * N,
        transcendentals=0,
        bytes_accessed=M * K * x_bytes + K * N * w_bytes + M * N * o_bytes + N * 4,
    )

    # Can the whole weight (single-buffered) sit in VMEM alongside a minimal row tile?
    resident_bytes = K * N * w_bytes + N * 4 + 2 * 8 * (K * x_bytes + N * o_bytes)

    if not force_tiled and resident_bytes <= budget:
        # --- Path A: weight VMEM-resident, grid tiles rows (M) only ------------
        tm = _choose_tm_resident(M, K, N, x_bytes, w_bytes, o_bytes, budget)
        grid = (pl.cdiv(M, tm),)
        out2 = pl.pallas_call(
            functools.partial(_linear_relu_resident_kernel, mxu_dtype=mxu_dtype),
            out_shape=jax.ShapeDtypeStruct((M, N), out_dtype),
            grid_spec=pltpu.PrefetchScalarGridSpec(
                num_scalar_prefetch=0,
                grid=grid,
                in_specs=[
                    pl.BlockSpec((tm, K), lambda i: (i, 0)),
                    # Constant index_map -> never re-fetched -> single buffer.
                    pl.BlockSpec((K, N), lambda i: (0, 0),
                                 pipeline_mode=pl.Buffered(1)),
                    pl.BlockSpec((1, N), lambda i: (0, 0),
                                 pipeline_mode=pl.Buffered(1)),
                ],
                out_specs=pl.BlockSpec((tm, N), lambda i: (i, 0)),
            ),
            compiler_params=pltpu.CompilerParams(
                dimension_semantics=("parallel",),
                vmem_limit_bytes=vmem_limit,
            ),
            cost_estimate=cost,
        )(x2, w, b)
    else:
        # --- Path B: 3-D (M, N, K) tiled matmul with f32 accumulator -----------
        tm, tn, tk = _choose_tiles_3d(M, K, N, x_bytes, w_bytes, o_bytes, budget)
        grid = (pl.cdiv(M, tm), pl.cdiv(N, tn), K // tk)
        out2 = pl.pallas_call(
            functools.partial(_linear_relu_tiled_kernel, mxu_dtype=mxu_dtype),
            out_shape=jax.ShapeDtypeStruct((M, N), out_dtype),
            grid_spec=pltpu.PrefetchScalarGridSpec(
                num_scalar_prefetch=0,
                grid=grid,
                in_specs=[
                    pl.BlockSpec((tm, tk), lambda i, j, k: (i, k)),
                    pl.BlockSpec((tk, tn), lambda i, j, k: (k, j)),
                    pl.BlockSpec((1, tn), lambda i, j, k: (0, j)),
                ],
                out_specs=pl.BlockSpec((tm, tn), lambda i, j, k: (i, j)),
                scratch_shapes=[pltpu.VMEM((tm, tn), jnp.float32)],
            ),
            compiler_params=pltpu.CompilerParams(
                dimension_semantics=("parallel", "parallel", "arbitrary"),
                vmem_limit_bytes=vmem_limit,
            ),
            cost_estimate=cost,
        )(x2, w, b)

    out = out2.reshape(*lead, N)
    if split is not None:
        # torch .chunk(split, dim=2): chunk size = ceil(N / split); the last chunk
        # may be smaller and the number of chunks may be < split.
        csize = -(-N // split)
        idx = list(range(csize, N, csize))
        return tuple(jnp.split(out, idx, axis=2))
    return out


# ---------------------------------------------------------------------------
# Init + reference + test
# ---------------------------------------------------------------------------

def _init_linear(key, fan_in, fan_out):
    """Deterministic init mimicking torch.nn.Linear: U(-1/sqrt(in), 1/sqrt(in))."""
    kw, kb = jax.random.split(key)
    bound = 1.0 / math.sqrt(fan_in)
    # stored as [in, out] (transposed vs torch) for direct x @ W in the kernel
    w = jax.random.uniform(kw, (fan_in, fan_out), jnp.float32, -bound, bound)
    b = jax.random.uniform(kb, (1, fan_out), jnp.float32, -bound, bound)
    return w, b


def _reference(x, w, b):
    """ReLU(x @ w + b) with the same operand dtypes / f32 accumulation."""
    y = jnp.dot(x.astype(w.dtype), w, preferred_element_type=jnp.float32) + b
    return jax.nn.relu(y)


if __name__ == "__main__":
    root = jax.random.PRNGKey(0)
    k_x, k_p, k_x2, k_p2 = jax.random.split(root, 4)

    # Module-sized example: [batch=2, seq=8, in=128] -> [2, 8, 128]
    B, S, IN_F, OUT_F = 2, 8, 128, 128
    x = jax.random.normal(k_x, (B, S, IN_F), jnp.float32)
    w32, b = _init_linear(k_p, IN_F, OUT_F)
    w16 = w32.astype(jnp.bfloat16)            # bf16-stored weights (default MXU path)

    # 1) default forward (bf16 MXU operands, f32 accumulation, weight-resident path)
    out = jax.block_until_ready(linear_activated(x, w16, b))
    ref16 = _reference(x, w16, b)
    np.testing.assert_allclose(np.asarray(out), np.asarray(ref16), rtol=1e-4, atol=1e-4)

    # 2) pure-f32 path (mxu_dtype=None) against the f32 reference
    out32 = jax.block_until_ready(linear_activated(x, w32, b, mxu_dtype=None))
    ref32 = _reference(x, w32, b)
    np.testing.assert_allclose(np.asarray(out32), np.asarray(ref32), rtol=1e-5, atol=1e-5)

    # 3) split=k path: torch .chunk(k, dim=2) semantics (even and uneven)
    chunks = jax.block_until_ready(linear_activated(x, w16, b, split=4))
    assert len(chunks) == 4
    for c, rc in zip(chunks, jnp.split(ref16, 4, axis=2)):
        np.testing.assert_allclose(np.asarray(c), np.asarray(rc), rtol=1e-4, atol=1e-4)
    chunks3 = jax.block_until_ready(linear_activated(x, w16, b, split=3))  # 43,43,42
    assert len(chunks3) == 3 and chunks3[0].shape[2] == 43 and chunks3[2].shape[2] == 42
    np.testing.assert_allclose(np.asarray(chunks3[2]), np.asarray(ref16[:, :, 86:]),
                               rtol=1e-4, atol=1e-4)

    # 4) exercise the 3-D tiled fallback path (K split into 3 tiles of 128)
    IN2, OUT2 = 384, 256
    x2 = jax.random.normal(k_x2, (B, S, IN2), jnp.float32)
    w2, b2 = _init_linear(k_p2, IN2, OUT2)
    w2 = w2.astype(jnp.bfloat16)
    out_t = jax.block_until_ready(linear_activated(x2, w2, b2, force_tiled=True))
    ref_t = _reference(x2, w2, b2)
    np.testing.assert_allclose(np.asarray(out_t), np.asarray(ref_t), rtol=1e-4, atol=1e-4)

    print("KERNEL_OK")
</pallas_src>

<mosaic_0001>
module attributes {stable_mosaic.version = 11 : i64} {
  func.func @_linear_relu_resident_kernel(%arg0: i32, %arg1: memref<16x128xf32, #tpu.memory_space<vmem>>, %arg2: memref<128x128xbf16, #tpu.memory_space<vmem>>, %arg3: memref<1x128xf32, #tpu.memory_space<vmem>>, %arg4: memref<16x128xf32, #tpu.memory_space<vmem>>) attributes {dimension_semantics = [#tpu.dimension_semantics<parallel>], iteration_bounds = array<i64: 1>, scalar_prefetch = 0 : i64, scratch_operands = 0 : i64, tpu.core_type = #tpu.core_type<tc>, window_params = [{transform_indices = @transform_0, window_bounds = array<i64: 16, 128>}, {pipeline_mode = #tpu.pipeline_mode<synchronous>, transform_indices = @transform_1, window_bounds = array<i64: 128, 128>}, {pipeline_mode = #tpu.pipeline_mode<synchronous>, transform_indices = @transform_2, window_bounds = array<i64: 1, 128>}, {transform_indices = @transform_3, window_bounds = array<i64: 16, 128>}]} {
    %c0 = arith.constant 0 : index
    %c0_0 = arith.constant 0 : index
    %0 = vector.load %arg1[%c0, %c0_0] : memref<16x128xf32, #tpu.memory_space<vmem>>, vector<16x128xf32>
    %c0_1 = arith.constant 0 : index
    %c0_2 = arith.constant 0 : index
    %1 = vector.load %arg2[%c0_1, %c0_2] : memref<128x128xbf16, #tpu.memory_space<vmem>>, vector<128x128xbf16>
    %2 = arith.truncf %0 : vector<16x128xf32> to vector<16x128xbf16>
    %cst = arith.constant dense<0.000000e+00> : vector<16x128xf32>
    %3 = tpu.matmul %2, %1, %cst {dimension_numbers = #tpu.dot_dimension_numbers<[1], [0], [0], [1], [0, 0, 1, 1], [], []>} : vector<16x128xbf16>, vector<128x128xbf16>, vector<16x128xf32> -> vector<16x128xf32>
    %c0_3 = arith.constant 0 : index
    %c0_4 = arith.constant 0 : index
    %4 = vector.load %arg3[%c0_3, %c0_4] : memref<1x128xf32, #tpu.memory_space<vmem>>, vector<1x128xf32>
    %5 = vector.broadcast %4 : vector<1x128xf32> to vector<16x128xf32>
    %6 = arith.addf %3, %5 : vector<16x128xf32>
    %cst_5 = arith.constant 0.000000e+00 : f32
    %7 = vector.broadcast %cst_5 : f32 to vector<16x128xf32>
    %8 = arith.maximumf %6, %7 : vector<16x128xf32>
    %c0_6 = arith.constant 0 : index
    %c0_7 = arith.constant 0 : index
    %9 = vector.load %arg4[%c0_6, %c0_7] : memref<16x128xf32, #tpu.memory_space<vmem>>, vector<16x128xf32>
    tpu.vector_store %arg4[%c0_6, %c0_7], %8 {strides = array<i32>} : memref<16x128xf32, #tpu.memory_space<vmem>>, vector<16x128xf32>,
    return
  }
  func.func @transform_0(%arg0: i32) -> (i32, i32) {
    %c0_i32 = arith.constant 0 : i32
    %c0_i32_0 = arith.constant 0 : i32
    return %arg0, %c0_i32 : i32, i32
  }
  func.func @transform_1(%arg0: i32) -> (i32, i32) {
    %c0_i32 = arith.constant 0 : i32
    %c0_i32_0 = arith.constant 0 : i32
    %c0_i32_1 = arith.constant 0 : i32
    return %c0_i32, %c0_i32_0 : i32, i32
  }
  func.func @transform_2(%arg0: i32) -> (i32, i32) {
    %c0_i32 = arith.constant 0 : i32
    %c0_i32_0 = arith.constant 0 : i32
    %c0_i32_1 = arith.constant 0 : i32
    return %c0_i32, %c0_i32_0 : i32, i32
  }
  func.func @transform_3(%arg0: i32) -> (i32, i32) {
    %c0_i32 = arith.constant 0 : i32
    %c0_i32_0 = arith.constant 0 : i32
    return %arg0, %c0_i32 : i32, i32
  }
}

</mosaic_0001>

<bundles_post_ra>
// kernel: tpu_custom_call.1
= control target key start
LH: loop header
LB: loop body
LE: loop exit
PB: predicated region body
PF: predicated region fallthrough
CT: control target
= control target key end

     0   :  { %8 = vsyncpa [#allocation3], 0  ;;  %s349_s0 = inlined_call_operand.hbm [shape: f32[16,128], index: 0, kind: input, shape index: {}]   ;;  %s350_s1 = inlined_call_operand.hbm [shape: bf16[128,128], index: 1, kind: input, shape index: {}]   ;;  %s351_s2 = inlined_call_operand.vmem [shape: f32[1,128], index: 2, kind: input, shape index: {}]   ;;  %s352_s3 = inlined_call_operand.hbm [shape: f32[16,128], index: 3, kind: output, shape index: {}]  }
   0x1   :  { %9 = vsyncpa [#allocation6], 0 }
   0x2   :  { %10 = vsyncpa [#allocation4], 0  ;;  %s302_s12 = smov [#allocation2]  }
   0x3   :  { %s16_s13 = sshll.u32 %s302_s12, 4  ;;  %s17_s13 = int_to_ptr.vmem [resolvable:$true] %s16_s13 }
   0x4   :  { %s244_s14 = scalar_lea.vmem %s17_s13, 256  ;;  %p249_p1 = scmp.lt.s32.totalorder %s17_s13, %s17_s13 }
   0x5   :  { %p245_p0 = scmp.ne.s32.totalorder %s17_s13, %s244_s14  ;;  %p250_p2 = scmp.lt.s32.totalorder %s244_s14, %s244_s14 }
   0x7   :  { %p251_p3 = por %p250_p2, %p249_p1 }
   0x9   :  { %p252_p4 = pnand %p251_p3, %p245_p0 }
   0xb   :  { %255 = shalt.err (!%p252_p4)
}
   0xc   :  { %s303_s15 = smov 128   ;;  %s304_s16 = smov 8  }
   0xd   :  { %22 = dma.hbm_to_vmem [thread:$0]  %s349_s0, 256, %s17_s13, [#allocation3], %s303_s15, %s303_s15, %s304_s16  }
   0xe   :  { %s305_s19 = smov [#allocation5]  }
   0xf   :  { %s28_s20 = sshll.u32 %s305_s19, 4  ;;  %s29_s20 = int_to_ptr.vmem [resolvable:$true] %s28_s20 }
  0x10   :  { %s264_s21 = scalar_lea.vmem %s29_s20, 1024  ;;  %p269_p6 = scmp.lt.s32.totalorder %s29_s20, %s29_s20 }
  0x11   :  { %p265_p5 = scmp.ne.s32.totalorder %s29_s20, %s264_s21  ;;  %p270_p7 = scmp.lt.s32.totalorder %s264_s21, %s264_s21 }
  0x13   :  { %p271_p8 = por %p270_p7, %p269_p6 }
  0x15   :  { %p272_p9 = pnand %p271_p8, %p265_p5 }
  0x17   :  { %275 = shalt.err (!%p272_p9)
}
  0x18   :  { %s306_s22 = smov 64   ;;  %s307_s23 = smov 4  }
  0x19   :  { %34 = dma.hbm_to_vmem [thread:$0]  %s350_s1, 1024, %s29_s20, [#allocation6], %s306_s22, %s306_s22, %s307_s23  }
  0x1a   :  { %296 = dma.done.wait [#allocation3], 256  }
  0x1b   :  { %297 = vsyncadd [#allocation3], 4294967040 }
  0x1c   :  { %298 = dma.done.wait [#allocation6], 1024  }
  0x1d   :  { %299 = vsyncadd [#allocation6], 4294966272  ;;  %v308_v0 = vmov 0.0   ;;  %vm309_vm0 = vmmov 0   ;;  %v228_v1 = vld [vmem:[#allocation5 + $0x38] sm:$0xff]   ;;  %v229_v2 = vld [vmem:[#allocation5 + $0x30] sm:$0xff]  }
  0x1e   :  { %199 = vmatprep.subr.bf16.mxu0 %v308_v0  ;;  %215 = vmatprep.mubr.msk.bf16.mxu0 %vm309_vm0, %v308_v0  ;;  %v230_v3 = vld [vmem:[#allocation5 + $0x28] sm:$0xff]   ;;  %v231_v4 = vld [vmem:[#allocation5 + $0x20] sm:$0xff]   ;;  %v232_v5 = vld [vmem:[#allocation5 + $0x18] sm:$0xff]   ;;  %s310_s26 = smov [#allocation7]  }
  0x1f   :  { %200 = vmatpush3.bf16.msra.mxu0 %v228_v1  ;;  %v233_v6 = vld [vmem:[#allocation5 + $0x10] sm:$0xff]   ;;  %v234_v7 = vld [vmem:[#allocation5 + $0x8] sm:$0xff]   ;;  %v235_v8 = vld [vmem:[#allocation5] sm:$0xff]   ;;  %s168_s27 = sshll.u32 %s310_s26, 4  ;;  %s169_s27 = int_to_ptr.vmem [resolvable:$true] %s168_s27 }
  0x20   :  { %201 = vmatprep.subr.bf16.mxu0 %v308_v0  ;;  %v44_v9 = vld [vmem:[#allocation2] sm:$0xff]  ;;  %v45_v10 = vld [vmem:[#allocation2 + $0x8] sm:$0xff]  ;;  %s276_s28 = scalar_lea.vmem %s169_s27, 256  ;;  %p281_p11 = scmp.lt.s32.totalorder %s169_s27, %s169_s27 }
  0x21   :  { %v62_v11 = vpack.c.bf16 %v45_v10, %v44_v9  ;;  %v181_v12 = vld [vmem:[%s351_s2] ss:$0 sm:$0xff]  ;;  %p277_p10 = scmp.ne.s32.totalorder %s169_s27, %s276_s28  ;;  %p282_p12 = scmp.lt.s32.totalorder %s276_s28, %s276_s28 }
  0x23   :  { %202 = vmatpush3.bf16.msra.mxu0 %v229_v2  ;;  %p283_p13 = por %p282_p12, %p281_p11 }
  0x24   :  { %203 = vmatprep.subr.bf16.mxu0 %v308_v0 }
  0x25   :  { %p284_p0 = pnand %p283_p13, %p277_p10 }
  0x27   :  { %204 = vmatpush3.bf16.msra.mxu0 %v230_v3 }
  0x28   :  { %205 = vmatprep.subr.bf16.mxu0 %v308_v0 }
  0x2b   :  { %206 = vmatpush3.bf16.msra.mxu0 %v231_v4 }
  0x2c   :  { %207 = vmatprep.subr.bf16.mxu0 %v308_v0 }
  0x2f   :  { %208 = vmatpush3.bf16.msra.mxu0 %v232_v5 }
  0x30   :  { %209 = vmatprep.subr.bf16.mxu0 %v308_v0 }
  0x33   :  { %210 = vmatpush3.bf16.msra.mxu0 %v233_v6 }
  0x34   :  { %211 = vmatprep.subr.bf16.mxu0 %v308_v0 }
  0x37   :  { %212 = vmatpush3.bf16.msra.mxu0 %v234_v7 }
  0x38   :  { %213 = vmatprep.subr.bf16.mxu0 %v308_v0 }
  0x3b   :  { %214 = vmatpush3.bf16.msra.mxu0 %v235_v8 }
  0x3e   :  { %216 = vmatmul.mubr.bf16.vlgmr.msra.gmra.mxu0 %v62_v11 }
  0xfe   :  { %v152_v13 = vpop.f32.mrf.mxu0 }
  0xff   :  { %v153_v14 = vadd.f32 %v181_v12, %v152_v13 }
 0x100   :  { %v217_v15 = vpop.f32.mrf.mxu0 }
 0x101   :  { %v159_v16 = vmax.f32 %v153_v14, 0.0 }
 0x102   :  { %v155_v17 = vpop.f32.mrf.mxu0 }
 0x103   :  { %161 = vst [vmem:[#allocation7] sm:$0xff] %v159_v16  ;;  %v156_v18 = vadd.f32 %v181_v12, %v155_v17 }
 0x104   :  { %v218_v19 = vpop.f32.mrf.mxu0 }
 0x105   :  { %v160_v20 = vmax.f32 %v156_v18, 0.0 }
 0x107   :  { %162 = vst [vmem:[#allocation7 + $0x8] sm:$0xff] %v160_v20 }
 0x108   :  { %287 = shalt.err (!%p284_p0)
}
 0x109   :  { %174 = dma.vmem_to_hbm [thread:$0]  %s169_s27, 256, %s352_s3, [#allocation4], %s303_s15, %s303_s15, %s304_s16  }
 0x10a   :  { %300 = dma.done.wait [#allocation4], 256  }
 0x10b   :  { %301 = vsyncadd [#allocation4], 4294967040 }
 0x10c   :  { %178 = vsyncpa [#allocation3], 1 }
 0x10d   :  { %179 = vsyncpa [#allocation6], 1 }
 0x10e   :  { %180 = vsyncpa [#allocation4], 1 }

</bundles_post_ra>
